<compile_context>
chip_gen: v6e
topology: v6e:2x2x1
jax: 0.10.0
libtpu: 0.0.40
codegen_flags: <defaults>
</compile_context>

<pallas_src>
import functools

import jax
import jax.numpy as jnp
from jax.experimental import pallas as pl
from jax.experimental.pallas import tpu as pltpu

_LANE = 128
_SUBLANE = 8


def _round_up(n, m):
    return ((n + m - 1) // m) * m


def _pad_dim(n, lane_pad_ratio):
    """Pad n to a multiple of 128 when the overhead is small, else to a multiple of 8."""
    n128 = _round_up(n, _LANE)
    if n128 <= lane_pad_ratio * n:
        return n128
    return _round_up(n, _SUBLANE)


def _default_budgets():
    """(block_budget_mib, vmem_limit_mib), generation-aware with a safe fallback."""
    vmem_bytes = 64 << 20  # conservative default: v7x per-TensorCore VMEM
    try:
        info_fn = getattr(pltpu, "get_tpu_info", None)
        if info_fn is not None:
            vmem_bytes = int(getattr(info_fn(), "vmem_capacity_bytes", vmem_bytes))
    except Exception:
        pass
    if vmem_bytes >= (96 << 20):   # v5e / v6e: 128 MiB VMEM
        return 40, 96
    return 20, 48                  # v7x: 64 MiB VMEM (32 MiB scoped default)


def _gcn_kernel(text_ref, adj_ref, w_ref, b_ref, out_ref, *,
                fold_halves, na_p, fout_real, ones_col, approx_recip):
    """One grid step = bt batch elements.

    text_ref : (bt, Nt_p, Fin_p)      VMEM
    adj_ref  : (bt, Na_p, Na_p)       VMEM  (single copy; row-sum via MXU trick)
    w_ref    : (Fin_p, Fout_p)        VMEM  (resident, single-buffered)
    b_ref    : (1, Fout_p)  f32       VMEM  (resident, single-buffered)
    out_ref  : (bt, Na_p, Fout_p)     VMEM
    """
    bt, nt, fin = text_ref.shape
    fout_p = w_ref.shape[1]

    # hidden = text @ W --- fold (bt*Nt) into the MXU M dimension for fill.
    text2d = text_ref[...].reshape(bt * nt, fin)
    hidden = jnp.dot(text2d, w_ref[...], preferred_element_type=jnp.float32)
    hidden = hidden.reshape(bt, nt, fout_p)

    if fold_halves:
        # adj.repeat(1,1,2) @ hidden == adj @ (hidden[:, :Na_p] + hidden[:, Na_p:])
        # (Na_p is a multiple of 8, so the slice stays on sublane boundaries.)
        hidden = hidden[:, :na_p, :] + hidden[:, na_p:, :]      # (bt, Na_p, Fout_p)

    adj = adj_ref[...]                                          # (bt, Na_p, Na_p)

    if ones_col:
        # Fold the denominator into the aggregation matmul: write 1.0 into the
        # first zero-padded output column; the MXU then produces
        # sum_j adj[b,i,j] in agg[..., fout_real] with f32 accumulation
        # (no f32 copy of adj, no cross-lane reduce).
        lane = jax.lax.broadcasted_iota(jnp.int32, hidden.shape, hidden.ndim - 1)
        hidden = jnp.where(lane == fout_real, 1.0, hidden)

    # Aggregation matmul (batched, MXU), f32 accumulation.
    agg = jnp.einsum("bij,bjf->bif", adj, hidden.astype(adj.dtype),
                     preferred_element_type=jnp.float32)        # (bt, Na_p, Fout_p)

    if ones_col:
        denom = agg[..., fout_real:fout_real + 1] + 1.0
    else:
        # Fout is already an exact multiple of 128 (no spare padded column):
        # fall back to a direct row-sum; the cast is a no-op for f32 adj.
        denom = jnp.sum(adj.astype(jnp.float32), axis=2, keepdims=True) + 1.0

    if approx_recip:
        out = agg * pl.reciprocal(denom, approx=True) + b_ref[...]
    else:
        out = agg / denom + b_ref[...]
    out_ref[...] = out.astype(out_ref.dtype)


def graph_convolution(text, adj, weight, bias=None, *,
                      cast_to_bf16=False, approx_reciprocal=True,
                      block_budget_mib=None, vmem_limit_mib=None,
                      lane_pad_ratio=1.25):
    """Pallas implementation of GraphConvolution.forward(text, adj)."""
    B, Nt, Fin = text.shape
    Bb, Na, Na2 = adj.shape
    assert Bb == B and Na2 == Na
    Fin_w, Fout = weight.shape
    assert Fin_w == Fin

    fold_halves = (Nt != Na)
    if fold_halves:
        assert Nt == 2 * Na, "repeat(1,1,2) branch requires text.shape[1] == 2*adj.shape[1]"

    if bias is None:
        bias = jnp.zeros((Fout,), dtype=jnp.float32)

    if block_budget_mib is None or vmem_limit_mib is None:
        auto_budget, auto_limit = _default_budgets()
        block_budget_mib = auto_budget if block_budget_mib is None else block_budget_mib
        vmem_limit_mib = auto_limit if vmem_limit_mib is None else vmem_limit_mib

    # ---- Padded sizes --------------------------------------------------------
    Fout_p = _round_up(Fout, _LANE)           # lane-dense output -> unmasked vst
    ones_col = Fout_p > Fout                  # spare column for the MXU row-sum
    Fin_p = _pad_dim(Fin, lane_pad_ratio)     # lane dim of text / sublane of W
    Na_p = _pad_dim(Na, lane_pad_ratio)       # adj lane & sublane dims / out rows
    Nt_p = 2 * Na_p if fold_halves else Na_p

    # ---- Pad parameters (zero rows/cols => results unchanged) ----------------
    weight_p = jnp.pad(weight, ((0, Fin_p - Fin), (0, Fout_p - Fout)))
    bias2d = jnp.pad(bias.astype(jnp.float32), ((0, Fout_p - Fout),)).reshape(1, Fout_p)

    # ---- Pad activations (zero-filled, sliced off below) ---------------------
    text_f = jnp.pad(text, ((0, 0), (0, 0), (0, Fin_p - Fin)))
    if fold_halves:
        # Pad each half separately to Na_p rows so the in-kernel fold
        # hidden[:, :Na_p] + hidden[:, Na_p:] still matches adj.repeat(1,1,2).
        text_f = text_f.reshape(B, 2, Na, Fin_p)
        text_f = jnp.pad(text_f, ((0, 0), (0, 0), (0, Na_p - Na), (0, 0)))
        text_f = text_f.reshape(B, 2 * Na_p, Fin_p)
    else:
        text_f = jnp.pad(text_f, ((0, 0), (0, Na_p - Na), (0, 0)))
    adj_f = jnp.pad(adj, ((0, 0), (0, Na_p - Na), (0, Na_p - Na)))

    out_dtype = text.dtype
    if cast_to_bf16:
        # bf16 MXU inputs (v5e/v6e/v7x); f32 accumulation is kept in-kernel.
        text_in = text_f.astype(jnp.bfloat16)
        adj_in = adj_f.astype(jnp.bfloat16)
        w_in = weight_p.astype(jnp.bfloat16)
    else:
        text_in, adj_in, w_in = text_f, adj_f, weight_p

    # ---- Pick bt (batch elements per grid step) from the VMEM budget ---------
    isz = jnp.dtype(text_in.dtype).itemsize
    osz = jnp.dtype(out_dtype).itemsize
    per_b = (2 * (Nt_p * Fin_p * isz            # text block (double-buffered)
                  + Na_p * Na_p * isz           # adj block  (double-buffered)
                  + Na_p * Fout_p * osz)        # out block  (double-buffered)
             + Nt_p * Fout_p * 4                # hidden (f32)
             + 2 * Na_p * Fout_p * 4)           # folded hidden + agg (f32)
    resident = Fin_p * Fout_p * isz + Fout_p * 4   # single-buffered weight + bias
    budget_bytes = (block_budget_mib << 20) - resident
    cap = max(1, budget_bytes // per_b)

    # Keep >= 4 grid steps when B allows (>= 2 per TensorCore on v7x) so the
    # BlockSpec pipeline always has a block to prefetch; >= 2 steps for B in {2,3}.
    if B >= 4:
        step_cap = max(1, B // 4)
    elif B >= 2:
        step_cap = max(1, B // 2)
    else:
        step_cap = 1
    bt = int(max(1, min(cap, step_cap, B)))

    # Batch padding instead of "largest divisor of B": padded batches are all
    # zero (out rows == bias) and are sliced off below.
    B_p = _round_up(B, bt)
    if B_p != B:
        text_in = jnp.pad(text_in, ((0, B_p - B), (0, 0), (0, 0)))
        adj_in = jnp.pad(adj_in, ((0, B_p - B), (0, 0), (0, 0)))
    grid = (B_p // bt,)

    flops = (2 * B_p * Nt_p * Fin_p * Fout_p       # text @ W
             + 2 * B_p * Na_p * Na_p * Fout_p)     # adj @ hidden (row-sum folded in)
    bytes_accessed = int(text_in.size * isz + adj_in.size * isz + w_in.size * isz
                         + bias2d.size * 4 + B_p * Na_p * Fout_p * osz)
    cost = pl.CostEstimate(flops=int(flops), transcendentals=int(B_p * Na_p),
                           bytes_accessed=bytes_accessed)

    kernel = functools.partial(
        _gcn_kernel, fold_halves=fold_halves, na_p=Na_p, fout_real=Fout,
        ones_col=ones_col, approx_recip=approx_reciprocal)

    def _call(single_buffer_params):
        # weight/bias have constant index maps -> double-buffering them only
        # burns VMEM; request a single buffer when the API supports it.
        extra = {"pipeline_mode": pl.Buffered(1)} if single_buffer_params else {}
        grid_spec = pltpu.PrefetchScalarGridSpec(
            num_scalar_prefetch=0,
            grid=grid,
            in_specs=[
                pl.BlockSpec((bt, Nt_p, Fin_p), lambda i: (i, 0, 0)),       # text
                pl.BlockSpec((bt, Na_p, Na_p), lambda i: (i, 0, 0)),        # adj (single copy)
                pl.BlockSpec((Fin_p, Fout_p), lambda i: (0, 0), **extra),   # weight (resident)
                pl.BlockSpec((1, Fout_p), lambda i: (0, 0), **extra),       # bias (resident)
            ],
            out_specs=pl.BlockSpec((bt, Na_p, Fout_p), lambda i: (i, 0, 0)),
        )
        return pl.pallas_call(
            kernel,
            out_shape=jax.ShapeDtypeStruct((B_p, Na_p, Fout_p), out_dtype),
            grid_spec=grid_spec,
            compiler_params=pltpu.CompilerParams(
                dimension_semantics=("parallel",),
                vmem_limit_bytes=vmem_limit_mib << 20,
            ),
            cost_estimate=cost,
        )(text_in, adj_in, w_in, bias2d)

    try:
        out = _call(True)
    except Exception:
        # pipeline_mode / Buffered(1) not supported on this Pallas version:
        # fall back to default (double-buffered) weight/bias specs.
        out = _call(False)

    return out[:B, :Na, :Fout]


def graph_convolution_ref(text, adj, weight, bias):
    """Pure-JAX reference mirroring the PyTorch forward."""
    hidden = jnp.matmul(text, weight)
    denom = jnp.sum(adj, axis=2, keepdims=True) + 1.0
    if text.shape[1] == adj.shape[1]:
        out = jnp.matmul(adj, hidden) / denom
    else:
        out = jnp.matmul(jnp.tile(adj, (1, 1, 2)), hidden) / denom
    return out + bias


if __name__ == "__main__":
    key = jax.random.PRNGKey(0)
    k_text, k_adj, k_w, k_b, k_text2, k_text3, k_adj3 = jax.random.split(key, 7)

    # Branch 1: Nt == Na (exact f32 MXU path; approx reciprocal -> loose tol).
    B, N, Fin, Fout = 4, 16, 32, 64
    text = jax.random.normal(k_text, (B, N, Fin), dtype=jnp.float32)
    adj = jax.random.uniform(k_adj, (B, N, N), dtype=jnp.float32)   # non-negative adjacency
    weight = jax.random.normal(k_w, (Fin, Fout), dtype=jnp.float32) * 0.1
    bias = jax.random.normal(k_b, (Fout,), dtype=jnp.float32) * 0.1

    out = jax.block_until_ready(graph_convolution(text, adj, weight, bias))
    ref = graph_convolution_ref(text, adj, weight, bias)
    assert out.shape == ref.shape == (B, N, Fout)
    assert jnp.allclose(out, ref, atol=2e-2, rtol=2e-2), "mismatch (Nt==Na branch)"

    # Branch 2: Nt == 2*Na (torch's adj.repeat(1,1,2) branch via in-kernel fold).
    text2 = jax.random.normal(k_text2, (B, 2 * N, Fin), dtype=jnp.float32)
    out2 = jax.block_until_ready(graph_convolution(text2, adj, weight, bias))
    ref2 = graph_convolution_ref(text2, adj, weight, bias)
    assert out2.shape == ref2.shape == (B, N, Fout)
    assert jnp.allclose(out2, ref2, atol=2e-2, rtol=2e-2), "mismatch (repeat branch)"

    # Branch 3: odd batch + unaligned node/feature counts (exercises Na/Fin
    # zero-padding, batch padding, and padded-row/col slicing).
    B3, N3, Fin3, Fout3 = 3, 10, 48, 20
    text3 = jax.random.normal(k_text3, (B3, 2 * N3, Fin3), dtype=jnp.float32)
    adj3 = jax.random.uniform(k_adj3, (B3, N3, N3), dtype=jnp.float32)
    w3 = jax.random.normal(k_w, (Fin3, Fout3), dtype=jnp.float32) * 0.1
    b3 = jax.random.normal(k_b, (Fout3,), dtype=jnp.float32) * 0.1
    out3 = jax.block_until_ready(graph_convolution(text3, adj3, w3, b3))
    ref3 = graph_convolution_ref(text3, adj3, w3, b3)
    assert out3.shape == ref3.shape == (B3, N3, Fout3)
    assert jnp.allclose(out3, ref3, atol=2e-2, rtol=2e-2), "mismatch (padded branch)"

    # bf16 MXU inputs (v5e/v6e/v7x fast path); f32 accumulation, looser tolerance.
    out4 = jax.block_until_ready(
        graph_convolution(text, adj, weight, bias, cast_to_bf16=True))
    assert jnp.allclose(out4, ref, atol=1e-1, rtol=1e-1), "mismatch (bf16 path)"

    print("KERNEL_OK")
</pallas_src>

<mosaic_0001>
module attributes {stable_mosaic.version = 11 : i64} {
  func.func @_gcn_kernel(%arg0: i32, %arg1: memref<1x16x32xf32, #tpu.memory_space<vmem>>, %arg2: memref<1x16x16xf32, #tpu.memory_space<vmem>>, %arg3: memref<32x128xf32, #tpu.memory_space<vmem>>, %arg4: memref<1x128xf32, #tpu.memory_space<vmem>>, %arg5: memref<1x16x128xf32, #tpu.memory_space<vmem>>) attributes {dimension_semantics = [#tpu.dimension_semantics<parallel>], iteration_bounds = array<i64: 4>, scalar_prefetch = 0 : i64, scratch_operands = 0 : i64, tpu.core_type = #tpu.core_type<tc>, window_params = [{transform_indices = @transform_0, window_bounds = array<i64: 1, 16, 32>}, {transform_indices = @transform_1, window_bounds = array<i64: 1, 16, 16>}, {pipeline_mode = #tpu.pipeline_mode<synchronous>, transform_indices = @transform_2, window_bounds = array<i64: 32, 128>}, {pipeline_mode = #tpu.pipeline_mode<synchronous>, transform_indices = @transform_3, window_bounds = array<i64: 1, 128>}, {transform_indices = @transform_4, window_bounds = array<i64: 1, 16, 128>}]} {
    %c0 = arith.constant 0 : index
    %c0_0 = arith.constant 0 : index
    %c0_1 = arith.constant 0 : index
    %0 = vector.load %arg1[%c0, %c0_0, %c0_1] : memref<1x16x32xf32, #tpu.memory_space<vmem>>, vector<1x16x32xf32>
    %1 = vector.shape_cast %0 : vector<1x16x32xf32> to vector<16x32xf32>
    %c0_2 = arith.constant 0 : index
    %c0_3 = arith.constant 0 : index
    %2 = vector.load %arg3[%c0_2, %c0_3] : memref<32x128xf32, #tpu.memory_space<vmem>>, vector<32x128xf32>
    %cst = arith.constant dense<0.000000e+00> : vector<16x128xf32>
    %3 = tpu.matmul %1, %2, %cst {dimension_numbers = #tpu.dot_dimension_numbers<[1], [0], [0], [1], [0, 0, 1, 1], [], []>} : vector<16x32xf32>, vector<32x128xf32>, vector<16x128xf32> -> vector<16x128xf32>
    %4 = vector.shape_cast %3 : vector<16x128xf32> to vector<1x16x128xf32>
    %c0_4 = arith.constant 0 : index
    %c0_5 = arith.constant 0 : index
    %c0_6 = arith.constant 0 : index
    %5 = vector.load %arg2[%c0_4, %c0_5, %c0_6] : memref<1x16x16xf32, #tpu.memory_space<vmem>>, vector<1x16x16xf32>
    %6 = tpu.iota {dimensions = array<i32: 2>} : vector<1x16x128xi32>
    %c64_i32 = arith.constant 64 : i32
    %7 = vector.broadcast %c64_i32 : i32 to vector<1x16x128xi32>
    %8 = arith.cmpi eq, %6, %7 : vector<1x16x128xi32>
    %cst_7 = arith.constant 1.000000e+00 : f32
    %9 = vector.broadcast %cst_7 : f32 to vector<1x16x128xf32>
    %10 = arith.select %8, %9, %4 : vector<1x16x128xi1>, vector<1x16x128xf32>
    "tpu.trace_start"() <{level = 10 : i32, message = "bij,bjf->bif"}> : () -> ()
    %cst_8 = arith.constant dense<0.000000e+00> : vector<1x16x128xf32>
    %11 = tpu.matmul %5, %10, %cst_8 {dimension_numbers = #tpu.dot_dimension_numbers<[2], [1], [1], [2], [0, 0, 0, 1, 1, 2], [0], [0]>} : vector<1x16x16xf32>, vector<1x16x128xf32>, vector<1x16x128xf32> -> vector<1x16x128xf32>
    "tpu.trace_stop"() : () -> ()
    %12 = vector.extract_strided_slice %11 {offsets = [0, 0, 64], sizes = [1, 16, 1], strides = [1, 1, 1]} : vector<1x16x128xf32> to vector<1x16x1xf32>
    %cst_9 = arith.constant 1.000000e+00 : f32
    %13 = vector.broadcast %cst_9 : f32 to vector<1x16x1xf32>
    %14 = arith.addf %12, %13 : vector<1x16x1xf32>
    %15 = tpu.reciprocal %14 {approx = true} : vector<1x16x1xf32> -> vector<1x16x1xf32>
    %16 = vector.broadcast %15 : vector<1x16x1xf32> to vector<1x16x128xf32>
    %17 = arith.mulf %11, %16 : vector<1x16x128xf32>
    %c0_10 = arith.constant 0 : index
    %c0_11 = arith.constant 0 : index
    %18 = vector.load %arg4[%c0_10, %c0_11] : memref<1x128xf32, #tpu.memory_space<vmem>>, vector<1x128xf32>
    %19 = vector.shape_cast %18 : vector<1x128xf32> to vector<1x1x128xf32>
    %20 = vector.broadcast %19 : vector<1x1x128xf32> to vector<1x16x128xf32>
    %21 = arith.addf %17, %20 : vector<1x16x128xf32>
    %c0_12 = arith.constant 0 : index
    %c0_13 = arith.constant 0 : index
    %c0_14 = arith.constant 0 : index
    %22 = vector.load %arg5[%c0_12, %c0_13, %c0_14] : memref<1x16x128xf32, #tpu.memory_space<vmem>>, vector<1x16x128xf32>
    tpu.vector_store %arg5[%c0_12, %c0_13, %c0_14], %21 {strides = array<i32>} : memref<1x16x128xf32, #tpu.memory_space<vmem>>, vector<1x16x128xf32>,
    return
  }
  func.func @transform_0(%arg0: i32) -> (i32, i32, i32) {
    %c0_i32 = arith.constant 0 : i32
    %c0_i32_0 = arith.constant 0 : i32
    %c0_i32_1 = arith.constant 0 : i32
    return %arg0, %c0_i32, %c0_i32_0 : i32, i32, i32
  }
  func.func @transform_1(%arg0: i32) -> (i32, i32, i32) {
    %c0_i32 = arith.constant 0 : i32
    %c0_i32_0 = arith.constant 0 : i32
    %c0_i32_1 = arith.constant 0 : i32
    return %arg0, %c0_i32, %c0_i32_0 : i32, i32, i32
  }
  func.func @transform_2(%arg0: i32) -> (i32, i32) {
    %c0_i32 = arith.constant 0 : i32
    %c0_i32_0 = arith.constant 0 : i32
    %c0_i32_1 = arith.constant 0 : i32
    return %c0_i32, %c0_i32_0 : i32, i32
  }
  func.func @transform_3(%arg0: i32) -> (i32, i32) {
    %c0_i32 = arith.constant 0 : i32
    %c0_i32_0 = arith.constant 0 : i32
    %c0_i32_1 = arith.constant 0 : i32
    return %c0_i32, %c0_i32_0 : i32, i32
  }
  func.func @transform_4(%arg0: i32) -> (i32, i32, i32) {
    %c0_i32 = arith.constant 0 : i32
    %c0_i32_0 = arith.constant 0 : i32
    %c0_i32_1 = arith.constant 0 : i32
    return %arg0, %c0_i32, %c0_i32_0 : i32, i32, i32
  }
}

module attributes {stable_mosaic.version = 11 : i64} {
  func.func @_gcn_kernel(%arg0: i32, %arg1: memref<1x16x32xf32, #tpu.memory_space<vmem>>, %arg2: memref<1x16x16xf32, #tpu.memory_space<vmem>>, %arg3: memref<32x128xf32, #tpu.memory_space<vmem>>, %arg4: memref<1x128xf32, #tpu.memory_space<vmem>>, %arg5: memref<1x16x128xf32, #tpu.memory_space<vmem>>) attributes {dimension_semantics = [#tpu.dimension_semantics<parallel>], iteration_bounds = array<i64: 4>, scalar_prefetch = 0 : i64, scratch_operands = 0 : i64, tpu.core_type = #tpu.core_type<tc>, window_params = [{transform_indices = @transform_0, window_bounds = array<i64: 1, 16, 32>}, {transform_indices = @transform_1, window_bounds = array<i64: 1, 16, 16>}, {pipeline_mode = #tpu.pipeline_mode<synchronous>, transform_indices = @transform_2, window_bounds = array<i64: 32, 128>}, {pipeline_mode = #tpu.pipeline_mode<synchronous>, transform_indices = @transform_3, window_bounds = array<i64: 1, 128>}, {transform_indices = @transform_4, window_bounds = array<i64: 1, 16, 128>}]} {
    %c0 = arith.constant 0 : index
    %c0_0 = arith.constant 0 : index
    %c0_1 = arith.constant 0 : index
    %0 = vector.load %arg1[%c0, %c0_0, %c0_1] : memref<1x16x32xf32, #tpu.memory_space<vmem>>, vector<1x16x32xf32>
    %1 = vector.shape_cast %0 : vector<1x16x32xf32> to vector<16x32xf32>
    %c0_2 = arith.constant 0 : index
    %c0_3 = arith.constant 0 : index
    %2 = vector.load %arg3[%c0_2, %c0_3] : memref<32x128xf32, #tpu.memory_space<vmem>>, vector<32x128xf32>
    %cst = arith.constant dense<0.000000e+00> : vector<16x128xf32>
    %3 = tpu.matmul %1, %2, %cst {dimension_numbers = #tpu.dot_dimension_numbers<[1], [0], [0], [1], [0, 0, 1, 1], [], []>} : vector<16x32xf32>, vector<32x128xf32>, vector<16x128xf32> -> vector<16x128xf32>
    %4 = vector.shape_cast %3 : vector<16x128xf32> to vector<1x16x128xf32>
    %c0_4 = arith.constant 0 : index
    %c0_5 = arith.constant 0 : index
    %c0_6 = arith.constant 0 : index
    %5 = vector.load %arg2[%c0_4, %c0_5, %c0_6] : memref<1x16x16xf32, #tpu.memory_space<vmem>>, vector<1x16x16xf32>
    %6 = tpu.iota {dimensions = array<i32: 2>} : vector<1x16x128xi32>
    %c64_i32 = arith.constant 64 : i32
    %7 = vector.broadcast %c64_i32 : i32 to vector<1x16x128xi32>
    %8 = arith.cmpi eq, %6, %7 : vector<1x16x128xi32>
    %cst_7 = arith.constant 1.000000e+00 : f32
    %9 = vector.broadcast %cst_7 : f32 to vector<1x16x128xf32>
    %10 = arith.select %8, %9, %4 : vector<1x16x128xi1>, vector<1x16x128xf32>
    "tpu.trace_start"() <{level = 10 : i32, message = "bij,bjf->bif"}> : () -> ()
    %cst_8 = arith.constant dense<0.000000e+00> : vector<1x16x128xf32>
    %11 = tpu.matmul %5, %10, %cst_8 {dimension_numbers = #tpu.dot_dimension_numbers<[2], [1], [1], [2], [0, 0, 0, 1, 1, 2], [0], [0]>} : vector<1x16x16xf32>, vector<1x16x128xf32>, vector<1x16x128xf32> -> vector<1x16x128xf32>
    "tpu.trace_stop"() : () -> ()
    %12 = vector.extract_strided_slice %11 {offsets = [0, 0, 64], sizes = [1, 16, 1], strides = [1, 1, 1]} : vector<1x16x128xf32> to vector<1x16x1xf32>
    %cst_9 = arith.constant 1.000000e+00 : f32
    %13 = vector.broadcast %cst_9 : f32 to vector<1x16x1xf32>
    %14 = arith.addf %12, %13 : vector<1x16x1xf32>
    %15 = tpu.reciprocal %14 {approx = true} : vector<1x16x1xf32> -> vector<1x16x1xf32>
    %16 = vector.broadcast %15 : vector<1x16x1xf32> to vector<1x16x128xf32>
    %17 = arith.mulf %11, %16 : vector<1x16x128xf32>
    %c0_10 = arith.constant 0 : index
    %c0_11 = arith.constant 0 : index
    %18 = vector.load %arg4[%c0_10, %c0_11] : memref<1x128xf32, #tpu.memory_space<vmem>>, vector<1x128xf32>
    %19 = vector.shape_cast %18 : vector<1x128xf32> to vector<1x1x128xf32>
    %20 = vector.broadcast %19 : vector<1x1x128xf32> to vector<1x16x128xf32>
    %21 = arith.addf %17, %20 : vector<1x16x128xf32>
    %c0_12 = arith.constant 0 : index
    %c0_13 = arith.constant 0 : index
    %c0_14 = arith.constant 0 : index
    %22 = vector.load %arg5[%c0_12, %c0_13, %c0_14] : memref<1x16x128xf32, #tpu.memory_space<vmem>>, vector<1x16x128xf32>
    tpu.vector_store %arg5[%c0_12, %c0_13, %c0_14], %21 {strides = array<i32>} : memref<1x16x128xf32, #tpu.memory_space<vmem>>, vector<1x16x128xf32>,
    return
  }
  func.func @transform_0(%arg0: i32) -> (i32, i32, i32) {
    %c0_i32 = arith.constant 0 : i32
    %c0_i32_0 = arith.constant 0 : i32
    %c0_i32_1 = arith.constant 0 : i32
    return %arg0, %c0_i32, %c0_i32_0 : i32, i32, i32
  }
  func.func @transform_1(%arg0: i32) -> (i32, i32, i32) {
    %c0_i32 = arith.constant 0 : i32
    %c0_i32_0 = arith.constant 0 : i32
    %c0_i32_1 = arith.constant 0 : i32
    return %arg0, %c0_i32, %c0_i32_0 : i32, i32, i32
  }
  func.func @transform_2(%arg0: i32) -> (i32, i32) {
    %c0_i32 = arith.constant 0 : i32
    %c0_i32_0 = arith.constant 0 : i32
    %c0_i32_1 = arith.constant 0 : i32
    return %c0_i32, %c0_i32_0 : i32, i32
  }
  func.func @transform_3(%arg0: i32) -> (i32, i32) {
    %c0_i32 = arith.constant 0 : i32
    %c0_i32_0 = arith.constant 0 : i32
    %c0_i32_1 = arith.constant 0 : i32
    return %c0_i32, %c0_i32_0 : i32, i32
  }
  func.func @transform_4(%arg0: i32) -> (i32, i32, i32) {
    %c0_i32 = arith.constant 0 : i32
    %c0_i32_0 = arith.constant 0 : i32
    %c0_i32_1 = arith.constant 0 : i32
    return %arg0, %c0_i32, %c0_i32_0 : i32, i32, i32
  }
}

</mosaic_0001>

<bundles_post_ra>
// kernel: tpu_custom_call.1
= control target key start
LH: loop header
LB: loop body
LE: loop exit
PB: predicated region body
PF: predicated region fallthrough
CT: control target
= control target key end

     0   :  { %s1154_s0 = inlined_call_operand.hbm [shape: f32[4,16,32], index: 0, kind: input, shape index: {}]   ;;  %s1155_s1 = inlined_call_operand.hbm [shape: f32[4,16,16], index: 1, kind: input, shape index: {}]   ;;  %s1156_s2 = inlined_call_operand.hbm [shape: f32[32,128], index: 2, kind: input, shape index: {}]   ;;  %s1157_s3 = inlined_call_operand.vmem [shape: f32[1,128], index: 3, kind: input, shape index: {}]   ;;  %s1158_s4 = inlined_call_operand.hbm [shape: f32[4,16,128], index: 4, kind: output, shape index: {}]  }
   0x1   :  { %1166 = sst [smem:[#allocation14_spill]] %s1154_s0 }
   0x2   :  { %1167 = sst [smem:[#allocation15_spill]] %s1156_s2 }
   0x3   :  { %9 = vsyncpa [#allocation3], 0 }
   0x4   :  { %11 = vsyncpa [#allocation3 + $0x1], 0 }
   0x5   :  { %12 = vsyncpa [#allocation6], 0 }
   0x6   :  { %14 = vsyncpa [#allocation6 + $0x1], 0 }
   0x7   :  { %15 = vsyncpa [#allocation4], 0 }
   0x8   :  { %17 = vsyncpa [#allocation4 + $0x1], 0  ;;  %s911_s15 = smov 0   ;;  %s913_s16 = smov 0  }
   0x9   :  { %s915_s17 = smov 0   ;;  %s917_s18 = smov 0  }
   0xa LB: > { %s932_s19 = sadd.s32 4294967295, %s875_s18   ;;  %s593_s20 = sadd.s32 4294967294, %s875_s18   ;;  %s875_s18 = sphi %s917_s18, %s1189_s18   ;;  %s871_s17 = sphi %s915_s17, %s1188_s17   ;;  %s867_s16 = sphi %s913_s16, %s1187_s16   ;;  %s863_s15 = sphi %s911_s15, %s1186_s15  }
   0xb   : > { %p43_p0 = scmp.ne.s32.totalorder %s867_s16, %s863_s15  ;;  %p1163_p1 = scmp.eq.s32.totalorder %s932_s19, 0 }
   0xc   : > { %p141_p3 = scmp.eq.s32.totalorder %s593_s20, 3  ;;  %p594_p5 = scmp.ge.s32.totalorder %s875_s18, 1 }
   0xd   : > { %p941_p4 = por %p1163_p1, %p43_p0  ;;  %p148_p7 = scmp.lt.s32.totalorder %s875_s18, 5 }
   0xe   : > { %p946_p6 = por %p141_p3, %p43_p0  ;;  %s877_s24 = smov [#allocation7]  }
   0xf   : > { %s1168_s21 = scalar_select %p941_p4, 1, 0 }
  0x10   : > { %s1169_s22 = scalar_select %p946_p6, 1, 0 }
  0x11   : > { %p951_p8 = pnand %p594_p5, %p148_p7  ;;  %s160_s25 = sshll.u32 %s877_s24, 4  ;;  %s161_s25 = int_to_ptr.vmem [resolvable:$true] %s160_s25 }
  0x12   : > { %s964_s27 = sadd.s32 1, %s875_s18   ;;  %s30_s28 = sadd.s32 1, %s871_s17 }
  0x13   : > { %p659_p9 = pneg %p951_p8  ;;  %s27_s29 = ssub.s32 %s875_s18, %s964_s27 }
  0x14   : > { %s732_s30 = scalar_lea.vmem %s161_s25, 512  ;;  %p740_p3 = scmp.lt.s32.totalorder %s161_s25, %s161_s25 }
  0x15   : > { %p959_p10 = pnand %p659_p9, %p1163_p1  ;;  %p733_p12 = scmp.ne.s32.totalorder %s161_s25, %s732_s30 }
  0x16   : > { %p741_p5 = scmp.lt.s32.totalorder %s732_s30, %s732_s30 }
  0x17   : > { %p723_p11 = pneg %p959_p10 }
  0x18   : > { %p742_p7 = por %p741_p5, %p740_p3 }
  0x19   : > { %p735_p13 = pnand %p733_p12, %p723_p11 }
  0x1b   : > { %p736_p0 = pneg %p735_p13 }
  0x1d   : > { %p743_p2 = pnand %p742_p7, %p736_p0 }
  0x1f   : > { %746 = shalt.err (!%p743_p2)
}
  0x20   : > { %s1159_s5 = smov 128   ;;  %s1161_s6 = smov 8  }
  0x21   : > { %s1172_s2 = sld [smem:[#allocation15_spill]]  ;;  %p28_p2 = scmp.eq.s32.totalorder %s27_s29, 0 }
  0x22   : > { %p37_p9 = scmp.ne.s32.totalorder %s871_s17, %s867_s16  ;;  %p38_p11 = scmp.eq.s32.totalorder %s875_s18, 0 }
  0x23   : > { %p675_p12 = scmp.lt.s32.totalorder %s875_s18, 4  ;;  %p1174_p0 = scmp.eq.s32.totalorder %s932_s19, 3 }
  0x24   : > { %s984_s9 = scalar_select %p28_p2, %s871_s17, %s30_s28  }
  0x25   : > { %p39_p13 = por %p38_p11, %p37_p9  ;;  %p988_p3 = por %p1174_p0, %p37_p9 }
  0x26   : > { %1173 = sst [smem:[#allocation13_spill]] %s984_s9  ;;  %s177_s11 = sand.u32 1, %s871_s17  }
  0x27   : > { %662 = dma.hbm_to_vmem [thread:$0]  (!%p959_p10), %s1172_s2, 512, %s161_s25, [#allocation6], %s1159_s5, %s1159_s5, %s1161_s6  }
  0x28   : > { %s1175_s10 = scalar_select %p988_p3, 1, 0 }
  0x29   : > { %s618_s12 = sshll.u32 %s875_s18, 8  ;;  %s994_s13 = sshll.u32 %s177_s11, 4 }
  0x2a   : > { %s1176_s0 = sld [smem:[#allocation14_spill]]  ;;  %s181_s25 = scalar_lea.vmem [#allocation2], %s994_s13 }
  0x2b   : > { %s188_s26 = sshll.u32 %s181_s25, 4  ;;  %p1002_p10 = pnand %p675_p12, %p39_p13  ;;  %s1006_s26 = int_to_ptr.vmem [resolvable:$true] %s188_s26 }
  0x2c   : > { %s1011_s7 = scalar_lea.hbm %s1155_s1, %s618_s12  ;;  %s1013_s8 = scalar_lea.sflag [#allocation3], %s177_s11 }
  0x2d   : > { %p749_p7 = pneg %p1002_p10 }
  0x30   : > { %s999_s24 = scalar_lea.hbm %s1176_s0, %s618_s12  ;;  %s752_s5 = scalar_lea.hbm %s1176_s0, 1024 }
  0x31   : > { %s747_s14 = scalar_lea.hbm %s999_s24, 256  ;;  %p753_p11 = scmp.lt.s32.totalorder %s999_s24, %s1176_s0 }
  0x32   : > { %p748_p5 = scmp.ne.s32.totalorder %s999_s24, %s747_s14  ;;  %p754_p12 = scmp.lt.s32.totalorder %s752_s5, %s747_s14 }
  0x34   : > { %p750_p2 = pnand %p749_p7, %p748_p5  ;;  %p755_p13 = por %p754_p12, %p753_p11 }
  0x36   : > { %p751_p9 = pneg %p750_p2 }
  0x38   : > { %p756_p0 = pnand %p755_p13, %p751_p9 }
  0x3a   : > { %759 = shalt.err (!%p756_p0)
}
  0x3b   : > { %s760_s11 = scalar_lea.vmem %s1006_s26, 256  ;;  %s880_s12 = smov [#allocation2]  }
  0x3c   : > { %p761_p1 = scmp.ne.s32.totalorder %s1006_s26, %s760_s11  ;;  %s765_s29 = sshll.u32 %s880_s12, 4  ;;  %s766_s29 = int_to_ptr.vmem [resolvable:$false] %s765_s29 }
  0x3d   : > { %s767_s30 = scalar_lea.vmem %s766_s29, 512  ;;  %p768_p6 = scmp.lt.s32.totalorder %s1006_s26, %s766_s29 }
  0x3e   : > { %p763_p5 = pnand %p761_p1, %p749_p7  ;;  %p769_p3 = scmp.lt.s32.totalorder %s767_s30, %s760_s11 }
  0x40   : > { %p764_p2 = pneg %p763_p5  ;;  %p770_p4 = por %p769_p3, %p768_p6 }
  0x42   : > { %p771_p11 = pnand %p770_p4, %p764_p2 }
  0x44   : > { %774 = shalt.err (!%p771_p11)
}
  0x45   : > { %s1178_s2 = smov 8   ;;  %s1179_s5 = smov 128  }
  0x46   : > { %666 = dma.hbm_to_vmem [thread:$0]  (!%p1002_p10), %s999_s24, 256, %s1006_s26, %s1013_s8, %s1179_s5, %s1179_s5, %s1178_s2  }
  0x47   : > { %s202_s6 = scalar_lea.vmem [#allocation5], %s994_s13  ;;  %s198_s20 = sand.u32 1, %s875_s18  }
  0x48   : > { %s209_s14 = sshll.u32 %s202_s6, 4  ;;  %s199_s25 = scalar_lea.sflag [#allocation6], %s198_s20  ;;  %s1045_s14 = int_to_ptr.vmem [resolvable:$true] %s209_s14 }
  0x49   : > { %s775_s11 = scalar_lea.hbm %s1011_s7, 256  ;;  %s780_s30 = scalar_lea.hbm %s1155_s1, 1024 }
  0x4a   : > { %p776_p1 = scmp.ne.s32.totalorder %s1011_s7, %s775_s11  ;;  %p781_p3 = scmp.lt.s32.totalorder %s1011_s7, %s1155_s1 }
  0x4b   : > { %p782_p9 = scmp.lt.s32.totalorder %s780_s30, %s775_s11 }
  0x4c   : > { %p778_p4 = pnand %p776_p1, %p749_p7 }
  0x4d   : > { %p783_p12 = por %p782_p9, %p781_p3 }
  0x4e   : > { %p779_p6 = pneg %p778_p4 }
  0x50   : > { %p784_p13 = pnand %p783_p12, %p779_p6 }
  0x52   : > { %787 = shalt.err (!%p784_p13)
}
  0x53   : > { %s788_s13 = scalar_lea.vmem %s1045_s14, 256  ;;  %s881_s24 = smov [#allocation5]  }
  0x54   : > { %p789_p0 = scmp.ne.s32.totalorder %s1045_s14, %s788_s13  ;;  %s793_s26 = sshll.u32 %s881_s24, 4  ;;  %s794_s26 = int_to_ptr.vmem [resolvable:$false] %s793_s26 }
  0x55   : > { %s795_s8 = scalar_lea.vmem %s794_s26, 512  ;;  %p796_p11 = scmp.lt.s32.totalorder %s1045_s14, %s794_s26 }
  0x56   : > { %p791_p5 = pnand %p789_p0, %p749_p7  ;;  %p797_p1 = scmp.lt.s32.totalorder %s795_s8, %s788_s13 }
  0x58   : > { %p792_p2 = pneg %p791_p5  ;;  %p798_p4 = por %p797_p1, %p796_p11 }
  0x5a   : > { %p799_p3 = pnand %p798_p4, %p792_p2 }
  0x5c   : > { %802 = shalt.err (!%p799_p3)
}
  0x5d   : > { %669 = dma.hbm_to_vmem [thread:$0]  (!%p1002_p10), %s1011_s7, 256, %s1045_s14, %s199_s25, %s1179_s5, %s1179_s5, %s1178_s2  }
  0x5e   : > { %221 = sbr.rel (%p951_p8) target bundleno = 670 (0x29e), region = 36  ;;  %s1075_s0 = sand.u32 (!%p951_p8), 1, %s867_s16  }
  0x5f   : > { %s1078_s9 = sshll.u32 (!%p951_p8), %s1075_s0, 4  ;;  %s224_s6 = scalar_lea.sflag (!%p951_p8), [#allocation3], %s1075_s0 }
  0x60   : > { %s227_s28 = scalar_lea.vmem (!%p951_p8), [#allocation2], %s1078_s9  ;;  %p1180_p7 = scmp.ne.s32.totalorder (!%p951_p8), %s1168_s21, 0 }
  0x63   : > { %846 = dma.done.wait (%p1180_p7), %s224_s6, 256  }
  0x64   : > { %848 = vsyncadd (%p1180_p7), %s224_s6, 4294967040  ;;  %s232_s23 = sand.u32 1, %s932_s19   ;;  %s236_s2 = scalar_lea.vmem [#allocation5], %s1078_s9 }
  0x65   : > { %s233_s7 = scalar_lea.sflag [#allocation6], %s232_s23 }
  0x66   : > { %850 = dma.done.wait (%p1180_p7), %s233_s7, 256  }
  0x67   : > { %852 = vsyncadd (%p1180_p7), %s233_s7, 4294967040  ;;  %p1181_p8 = scmp.eq.s32.totalorder %s932_s19, 0 }
  0x69   : > { %854 = dma.done.wait (%p1181_p8), [#allocation6], 512   ;;  %p1182_p10 = pmov %p1181_p8 }
  0x6a   : > { %vm276_vm0 = vcmask 261120   ;;  %v275_v0 = vld [vmem:[#allocation7 + $0x18] sm:$0xff]  ;;  %v274_v1 = vld [vmem:[#allocation7 + $0x10] sm:$0xff]  ;;  %v273_v3 = vld [vmem:[#allocation7 + $0x8] sm:$0xff]  ;;  %vm365_vm1 = vcmask 130048   ;;  %v360_v7 = vlaneseq  ;;  %v882_v14 = vmov 64  }
  0x6b   : > { %856 = vsyncadd (%p1182_p10), [#allocation6], 4294966784  ;;  %631 = vmatprep.subr.mxu0 %v275_v0  ;;  %v270_v2 = vld [vmem:[%s227_s28] sm:$0xff]  ;;  %v271_v5 = vld [vmem:[%s227_s28 + $0x8] sm:$0xff]  ;;  %716 = vset.pattern.permute.xlu0 %v882_v14  ;;  %s269_s14 = scalar_lea.vmem [#allocation8], %s1078_s9  ;;  %s620_s25 = sshll.u32 %s932_s19, 8 }
  0x6c   : > { %632 = vmatpush3.msra.mxu0 %v275_v0  ;;  %639 = vmatprep.mubr.msk.f32.mxu0 %vm276_vm0, %v270_v2  ;;  %v272_v4 = vld [vmem:[#allocation7] sm:$0xff]  ;;  %v361_v8 = vand.u32 127, %v360_v7  ;;  %v359_v13 = vld [vmem:[%s236_s2 + $0x8] sm:$0xff]  ;;  %s488_s20 = sshll.u32 %s269_s14, 4  ;;  %s1112_s29 = scalar_lea.hbm %s1158_s4, %s620_s25  ;;  %s1107_s20 = int_to_ptr.vmem [resolvable:$true] %s488_s20 }
  0x6d   : > { %633 = vmatprep.subr.mxu0 %v274_v1  ;;  %v358_v6 = vld [vmem:[%s236_s2] sm:$0xff]  ;;  %s475_s30 = scalar_lea.sflag [#allocation4], %s1075_s0  ;;  %s803_s13 = scalar_lea.vmem %s1107_s20, 256 }
  0x6e   : > { %634 = vmatpush3.msra.mxu0 %v274_v1  ;;  %646 = vmatprep.mubr.msk.f32.mxu1 %vm365_vm1, %v358_v6  ;;  %vm362_vm2 = vcmp.eq.s32.totalorder %v361_v8, 64  ;;  %v612_v21 = vld [vmem:[%s1157_s3] ss:$0 sm:$0xff]  ;;  %p804_p6 = scmp.ne.s32.totalorder %s1107_s20, %s803_s13  ;;  %p1183_p9 = scmp.ne.s32.totalorder %s1175_s10, 0 }
  0x6f   : > { %635 = vmatprep.subr.mxu0 %v273_v3  ;;  %s883_s19 = smov [#allocation8]  }
  0x70   : > { %636 = vmatpush3.msra.mxu0 %v273_v3  ;;  %p805_p12 = pnand %p804_p6, %p1183_p9  ;;  %s807_s24 = sshll.u32 %s883_s19, 4  ;;  %s808_s24 = int_to_ptr.vmem [resolvable:$false] %s807_s24 }
  0x71   : > { %637 = vmatprep.subr.mxu0 %v272_v4  ;;  %s809_s26 = scalar_lea.vmem %s808_s24, 512  ;;  %p810_p0 = scmp.lt.s32.totalorder %s1107_s20, %s808_s24 }
  0x72   : > { %638 = vmatpush3.msra.mxu0 %v272_v4  ;;  %p806_p13 = pneg %p805_p12  ;;  %p811_p5 = scmp.lt.s32.totalorder %s809_s26, %s803_s13 }
  0x73   : > { %640 = vmatmul.mubr.msk.f32.vlgmr.msra.gmra.mxu0 %vm276_vm0, %v271_v5 }
  0x74   : > { %p812_p2 = por %p811_p5, %p810_p0 }
  0x76   : > { %p813_p11 = pnand %p812_p2, %p806_p13 }
 0x133   : > { %v641_v9 = vpop.f32.mrf.mxu0 }
 0x134   : > { %v364_v10 = vsel %vm362_vm2, 1.0, %v641_v9 }
 0x135   : > { %v349_v11 = vpop.f32.mrf.mxu0  ;;  %642 = vmatprep.subr.mxu1 %v364_v10 }
 0x136   : > { %v363_v12 = vsel %vm362_vm2, 1.0, %v349_v11  ;;  %643 = vmatpush3.msra.mxu1 %v364_v10 }
 0x137   : > { %644 = vmatprep.subr.mxu1 %v363_v12 }
 0x138   : > { %645 = vmatpush3.msra.mxu1 %v363_v12 }
 0x139   : > { %647 = vmatmul.mubr.msk.f32.vlgmr.msra.gmra.mxu1 %vm365_vm1, %v359_v13 }
 0x1f9   : > { %v648_v15 = vpop.f32.mrf.mxu1 }
 0x1fa   : > { %v448_v18 = vadd.f32 1.0, %v648_v15 }
 0x1fb   : > { %v438_v16 = vpop.f32.mrf.mxu1 }
 0x1fc   : > { %v447_v17 = vadd.f32 1.0, %v438_v16 }
 0x1fe   : > { %717 = vrcp.f32 %v447_v17 }
 0x1ff   : > { %719 = vrcp.f32 %v448_v18 }
 0x20b   : > { %v718_v19 = vpop.eup %717 }
 0x20c   : > { %453 = vperm.xlu0 %716, %v718_v19   ;;  %v720_v20 = vpop.eup %719 }
 0x210   : > { %458 = vperm.xlu0 %716, %v720_v20  }
 0x287   : > { %v454_v22 = vpop.permute.xlu0 %453 }
 0x288   : > { %v461_v23 = vmul.f32 %v454_v22, %v438_v16 }
 0x28a   : > { %v470_v24 = vadd.f32 %v612_v21, %v461_v23 }
 0x28b   : > { %v459_v25 = vpop.permute.xlu0 %458 }
 0x28c   : > { %472 = vst [vmem:[%s269_s14] sm:$0xff] %v470_v24  ;;  %v462_v26 = vmul.f32 %v648_v15, %v459_v25 }
 0x28e   : > { %v471_v27 = vadd.f32 %v612_v21, %v462_v26 }
 0x290   : > { %473 = vst [vmem:[%s269_s14 + $0x8] sm:$0xff] %v471_v27 }
 0x291   : > { %816 = shalt.err (!%p813_p11)
}
 0x292   : > { %s817_s8 = scalar_lea.hbm %s1112_s29, 256  ;;  %s821_s28 = scalar_lea.hbm %s1158_s4, 1024 }
 0x293   : > { %p818_p1 = scmp.ne.s32.totalorder %s1112_s29, %s817_s8  ;;  %p822_p7 = scmp.lt.s32.totalorder %s1112_s29, %s1158_s4 }
 0x294   : > { %p823_p8 = scmp.lt.s32.totalorder %s821_s28, %s817_s8 }
 0x295   : > { %p819_p4 = pnand %p818_p1, %p1183_p9 }
 0x296   : > { %p824_p10 = por %p823_p8, %p822_p7 }
 0x297   : > { %p820_p3 = pneg %p819_p4 }
 0x299   : > { %p825_p6 = pnand %p824_p10, %p820_p3 }
 0x29b   : > { %828 = shalt.err (!%p825_p6)
}
 0x29c   : > { %s884_s2 = smov 128   ;;  %s885_s21 = smov 8  }
 0x29d   : > { %657 = dma.vmem_to_hbm [thread:$0]  (%p1183_p9), %s1107_s20, 256, %s1112_s29, %s475_s30, %s884_s2, %s884_s2, %s885_s21  }
 0x29e PF: > { %p677_p12 = scmp.ge.s32.totalorder %s875_s18, 2  ;;  %s503_s5 = sand.u32 1, %s863_s15  }
 0x29f   : > { %p1184_p13 = scmp.ne.s32.totalorder %s1169_s22, 0  ;;  %s504_s14 = scalar_lea.sflag [#allocation4], %s503_s5 }
 0x2a1   : > { %p671_p0 = pnand %p677_p12, %p1184_p13 }
 0x2a3   : > { %p672_p5 = pneg %p671_p0 }
 0x2a5   : > { %858 = dma.done.wait (%p672_p5), %s504_s14, 256  }
 0x2a6   : > { %860 = vsyncadd (%p672_p5), %s504_s14, 4294967040  ;;  %s1185_s25 = sld [smem:[#allocation13_spill]]  ;;  %p20_p2 = scmp.ge.s32.totalorder %s964_s27, 6  }
 0x2a7   : > { %s1186_s15 = smov %s867_s16  ;;  %s1187_s16 = smov %s871_s17 }
 0x2a8   : > { %s1189_s18 = smov %s964_s27  ;;  %22 = sbr.rel (!%p20_p2) target bundleno = 10 (0xa), region = 98 }
 0x2ac   : > { %s1188_s17 = smov %s1185_s25 }
 0x2ad   :  { %509 = vsyncpa [#allocation3], 1 }
 0x2ae   :  { %511 = vsyncpa [#allocation3 + $0x1], 1 }
 0x2af   :  { %512 = vsyncpa [#allocation6], 1 }
 0x2b0   :  { %514 = vsyncpa [#allocation6 + $0x1], 1 }
 0x2b1   :  { %515 = vsyncpa [#allocation4], 1 }
 0x2b2   :  { %517 = vsyncpa [#allocation4 + $0x1], 1 }

// kernel: tpu_custom_call.1
= control target key start
LH: loop header
LB: loop body
LE: loop exit
PB: predicated region body
PF: predicated region fallthrough
CT: control target
= control target key end

     0   :  { %s1154_s0 = inlined_call_operand.hbm [shape: f32[4,16,32], index: 0, kind: input, shape index: {}]   ;;  %s1155_s1 = inlined_call_operand.hbm [shape: f32[4,16,16], index: 1, kind: input, shape index: {}]   ;;  %s1156_s2 = inlined_call_operand.hbm [shape: f32[32,128], index: 2, kind: input, shape index: {}]   ;;  %s1157_s3 = inlined_call_operand.vmem [shape: f32[1,128], index: 3, kind: input, shape index: {}]   ;;  %s1158_s4 = inlined_call_operand.hbm [shape: f32[4,16,128], index: 4, kind: output, shape index: {}]  }
   0x1   :  { %1166 = sst [smem:[#allocation14_spill]] %s1154_s0 }
   0x2   :  { %1167 = sst [smem:[#allocation15_spill]] %s1156_s2 }
   0x3   :  { %9 = vsyncpa [#allocation3], 0 }
   0x4   :  { %11 = vsyncpa [#allocation3 + $0x1], 0 }
   0x5   :  { %12 = vsyncpa [#allocation6], 0 }
   0x6   :  { %14 = vsyncpa [#allocation6 + $0x1], 0 }
   0x7   :  { %15 = vsyncpa [#allocation4], 0 }
   0x8   :  { %17 = vsyncpa [#allocation4 + $0x1], 0  ;;  %s911_s15 = smov 0   ;;  %s913_s16 = smov 0  }
   0x9   :  { %s915_s17 = smov 0   ;;  %s917_s18 = smov 0  }
   0xa LB: > { %s932_s19 = sadd.s32 4294967295, %s875_s18   ;;  %s593_s20 = sadd.s32 4294967294, %s875_s18   ;;  %s875_s18 = sphi %s917_s18, %s1189_s18   ;;  %s871_s17 = sphi %s915_s17, %s1188_s17   ;;  %s867_s16 = sphi %s913_s16, %s1187_s16   ;;  %s863_s15 = sphi %s911_s15, %s1186_s15  }
   0xb   : > { %p43_p0 = scmp.ne.s32.totalorder %s867_s16, %s863_s15  ;;  %p1163_p1 = scmp.eq.s32.totalorder %s932_s19, 0 }
   0xc   : > { %p141_p3 = scmp.eq.s32.totalorder %s593_s20, 3  ;;  %p594_p5 = scmp.ge.s32.totalorder %s875_s18, 1 }
   0xd   : > { %p941_p4 = por %p1163_p1, %p43_p0  ;;  %p148_p7 = scmp.lt.s32.totalorder %s875_s18, 5 }
   0xe   : > { %p946_p6 = por %p141_p3, %p43_p0  ;;  %s877_s24 = smov [#allocation7]  }
   0xf   : > { %s1168_s21 = scalar_select %p941_p4, 1, 0 }
  0x10   : > { %s1169_s22 = scalar_select %p946_p6, 1, 0 }
  0x11   : > { %p951_p8 = pnand %p594_p5, %p148_p7  ;;  %s160_s25 = sshll.u32 %s877_s24, 4  ;;  %s161_s25 = int_to_ptr.vmem [resolvable:$true] %s160_s25 }
  0x12   : > { %s964_s27 = sadd.s32 1, %s875_s18   ;;  %s30_s28 = sadd.s32 1, %s871_s17 }
  0x13   : > { %p659_p9 = pneg %p951_p8  ;;  %s27_s29 = ssub.s32 %s875_s18, %s964_s27 }
  0x14   : > { %s732_s30 = scalar_lea.vmem %s161_s25, 512  ;;  %p740_p3 = scmp.lt.s32.totalorder %s161_s25, %s161_s25 }
  0x15   : > { %p959_p10 = pnand %p659_p9, %p1163_p1  ;;  %p733_p12 = scmp.ne.s32.totalorder %s161_s25, %s732_s30 }
  0x16   : > { %p741_p5 = scmp.lt.s32.totalorder %s732_s30, %s732_s30 }
  0x17   : > { %p723_p11 = pneg %p959_p10 }
  0x18   : > { %p742_p7 = por %p741_p5, %p740_p3 }
  0x19   : > { %p735_p13 = pnand %p733_p12, %p723_p11 }
  0x1b   : > { %p736_p0 = pneg %p735_p13 }
  0x1d   : > { %p743_p2 = pnand %p742_p7, %p736_p0 }
  0x1f   : > { %746 = shalt.err (!%p743_p2)
}
  0x20   : > { %s1159_s5 = smov 128   ;;  %s1161_s6 = smov 8  }
  0x21   : > { %s1172_s2 = sld [smem:[#allocation15_spill]]  ;;  %p28_p2 = scmp.eq.s32.totalorder %s27_s29, 0 }
  0x22   : > { %p37_p9 = scmp.ne.s32.totalorder %s871_s17, %s867_s16  ;;  %p38_p11 = scmp.eq.s32.totalorder %s875_s18, 0 }
  0x23   : > { %p675_p12 = scmp.lt.s32.totalorder %s875_s18, 4  ;;  %p1174_p0 = scmp.eq.s32.totalorder %s932_s19, 3 }
  0x24   : > { %s984_s9 = scalar_select %p28_p2, %s871_s17, %s30_s28  }
  0x25   : > { %p39_p13 = por %p38_p11, %p37_p9  ;;  %p988_p3 = por %p1174_p0, %p37_p9 }
  0x26   : > { %1173 = sst [smem:[#allocation13_spill]] %s984_s9  ;;  %s177_s11 = sand.u32 1, %s871_s17  }
  0x27   : > { %662 = dma.hbm_to_vmem [thread:$0]  (!%p959_p10), %s1172_s2, 512, %s161_s25, [#allocation6], %s1159_s5, %s1159_s5, %s1161_s6  }
  0x28   : > { %s1175_s10 = scalar_select %p988_p3, 1, 0 }
  0x29   : > { %s618_s12 = sshll.u32 %s875_s18, 8  ;;  %s994_s13 = sshll.u32 %s177_s11, 4 }
  0x2a   : > { %s1176_s0 = sld [smem:[#allocation14_spill]]  ;;  %s181_s25 = scalar_lea.vmem [#allocation2], %s994_s13 }
  0x2b   : > { %s188_s26 = sshll.u32 %s181_s25, 4  ;;  %p1002_p10 = pnand %p675_p12, %p39_p13  ;;  %s1006_s26 = int_to_ptr.vmem [resolvable:$true] %s188_s26 }
  0x2c   : > { %s1011_s7 = scalar_lea.hbm %s1155_s1, %s618_s12  ;;  %s1013_s8 = scalar_lea.sflag [#allocation3], %s177_s11 }
  0x2d   : > { %p749_p7 = pneg %p1002_p10 }
  0x30   : > { %s999_s24 = scalar_lea.hbm %s1176_s0, %s618_s12  ;;  %s752_s5 = scalar_lea.hbm %s1176_s0, 1024 }
  0x31   : > { %s747_s14 = scalar_lea.hbm %s999_s24, 256  ;;  %p753_p11 = scmp.lt.s32.totalorder %s999_s24, %s1176_s0 }
  0x32   : > { %p748_p5 = scmp.ne.s32.totalorder %s999_s24, %s747_s14  ;;  %p754_p12 = scmp.lt.s32.totalorder %s752_s5, %s747_s14 }
  0x34   : > { %p750_p2 = pnand %p749_p7, %p748_p5  ;;  %p755_p13 = por %p754_p12, %p753_p11 }
  0x36   : > { %p751_p9 = pneg %p750_p2 }
  0x38   : > { %p756_p0 = pnand %p755_p13, %p751_p9 }
  0x3a   : > { %759 = shalt.err (!%p756_p0)
}
  0x3b   : > { %s760_s11 = scalar_lea.vmem %s1006_s26, 256  ;;  %s880_s12 = smov [#allocation2]  }
  0x3c   : > { %p761_p1 = scmp.ne.s32.totalorder %s1006_s26, %s760_s11  ;;  %s765_s29 = sshll.u32 %s880_s12, 4  ;;  %s766_s29 = int_to_ptr.vmem [resolvable:$false] %s765_s29 }
  0x3d   : > { %s767_s30 = scalar_lea.vmem %s766_s29, 512  ;;  %p768_p6 = scmp.lt.s32.totalorder %s1006_s26, %s766_s29 }
  0x3e   : > { %p763_p5 = pnand %p761_p1, %p749_p7  ;;  %p769_p3 = scmp.lt.s32.totalorder %s767_s30, %s760_s11 }
  0x40   : > { %p764_p2 = pneg %p763_p5  ;;  %p770_p4 = por %p769_p3, %p768_p6 }
  0x42   : > { %p771_p11 = pnand %p770_p4, %p764_p2 }
  0x44   : > { %774 = shalt.err (!%p771_p11)
}
  0x45   : > { %s1178_s2 = smov 8   ;;  %s1179_s5 = smov 128  }
  0x46   : > { %666 = dma.hbm_to_vmem [thread:$0]  (!%p1002_p10), %s999_s24, 256, %s1006_s26, %s1013_s8, %s1179_s5, %s1179_s5, %s1178_s2  }
  0x47   : > { %s202_s6 = scalar_lea.vmem [#allocation5], %s994_s13  ;;  %s198_s20 = sand.u32 1, %s875_s18  }
  0x48   : > { %s209_s14 = sshll.u32 %s202_s6, 4  ;;  %s199_s25 = scalar_lea.sflag [#allocation6], %s198_s20  ;;  %s1045_s14 = int_to_ptr.vmem [resolvable:$true] %s209_s14 }
  0x49   : > { %s775_s11 = scalar_lea.hbm %s1011_s7, 256  ;;  %s780_s30 = scalar_lea.hbm %s1155_s1, 1024 }
  0x4a   : > { %p776_p1 = scmp.ne.s32.totalorder %s1011_s7, %s775_s11  ;;  %p781_p3 = scmp.lt.s32.totalorder %s1011_s7, %s1155_s1 }
  0x4b   : > { %p782_p9 = scmp.lt.s32.totalorder %s780_s30, %s775_s11 }
  0x4c   : > { %p778_p4 = pnand %p776_p1, %p749_p7 }
  0x4d   : > { %p783_p12 = por %p782_p9, %p781_p3 }
  0x4e   : > { %p779_p6 = pneg %p778_p4 }
  0x50   : > { %p784_p13 = pnand %p783_p12, %p779_p6 }
  0x52   : > { %787 = shalt.err (!%p784_p13)
}
  0x53   : > { %s788_s13 = scalar_lea.vmem %s1045_s14, 256  ;;  %s881_s24 = smov [#allocation5]  }
  0x54   : > { %p789_p0 = scmp.ne.s32.totalorder %s1045_s14, %s788_s13  ;;  %s793_s26 = sshll.u32 %s881_s24, 4  ;;  %s794_s26 = int_to_ptr.vmem [resolvable:$false] %s793_s26 }
  0x55   : > { %s795_s8 = scalar_lea.vmem %s794_s26, 512  ;;  %p796_p11 = scmp.lt.s32.totalorder %s1045_s14, %s794_s26 }
  0x56   : > { %p791_p5 = pnand %p789_p0, %p749_p7  ;;  %p797_p1 = scmp.lt.s32.totalorder %s795_s8, %s788_s13 }
  0x58   : > { %p792_p2 = pneg %p791_p5  ;;  %p798_p4 = por %p797_p1, %p796_p11 }
  0x5a   : > { %p799_p3 = pnand %p798_p4, %p792_p2 }
  0x5c   : > { %802 = shalt.err (!%p799_p3)
}
  0x5d   : > { %669 = dma.hbm_to_vmem [thread:$0]  (!%p1002_p10), %s1011_s7, 256, %s1045_s14, %s199_s25, %s1179_s5, %s1179_s5, %s1178_s2  }
  0x5e   : > { %221 = sbr.rel (%p951_p8) target bundleno = 670 (0x29e), region = 36  ;;  %s1075_s0 = sand.u32 (!%p951_p8), 1, %s867_s16  }
  0x5f   : > { %s1078_s9 = sshll.u32 (!%p951_p8), %s1075_s0, 4  ;;  %s224_s6 = scalar_lea.sflag (!%p951_p8), [#allocation3], %s1075_s0 }
  0x60   : > { %s227_s28 = scalar_lea.vmem (!%p951_p8), [#allocation2], %s1078_s9  ;;  %p1180_p7 = scmp.ne.s32.totalorder (!%p951_p8), %s1168_s21, 0 }
  0x63   : > { %846 = dma.done.wait (%p1180_p7), %s224_s6, 256  }
  0x64   : > { %848 = vsyncadd (%p1180_p7), %s224_s6, 4294967040  ;;  %s232_s23 = sand.u32 1, %s932_s19   ;;  %s236_s2 = scalar_lea.vmem [#allocation5], %s1078_s9 }
  0x65   : > { %s233_s7 = scalar_lea.sflag [#allocation6], %s232_s23 }
  0x66   : > { %850 = dma.done.wait (%p1180_p7), %s233_s7, 256  }
  0x67   : > { %852 = vsyncadd (%p1180_p7), %s233_s7, 4294967040  ;;  %p1181_p8 = scmp.eq.s32.totalorder %s932_s19, 0 }
  0x69   : > { %854 = dma.done.wait (%p1181_p8), [#allocation6], 512   ;;  %p1182_p10 = pmov %p1181_p8 }
  0x6a   : > { %vm276_vm0 = vcmask 261120   ;;  %v275_v0 = vld [vmem:[#allocation7 + $0x18] sm:$0xff]  ;;  %v274_v1 = vld [vmem:[#allocation7 + $0x10] sm:$0xff]  ;;  %v273_v3 = vld [vmem:[#allocation7 + $0x8] sm:$0xff]  ;;  %vm365_vm1 = vcmask 130048   ;;  %v360_v7 = vlaneseq  ;;  %v882_v14 = vmov 64  }
  0x6b   : > { %856 = vsyncadd (%p1182_p10), [#allocation6], 4294966784  ;;  %631 = vmatprep.subr.mxu0 %v275_v0  ;;  %v270_v2 = vld [vmem:[%s227_s28] sm:$0xff]  ;;  %v271_v5 = vld [vmem:[%s227_s28 + $0x8] sm:$0xff]  ;;  %716 = vset.pattern.permute.xlu0 %v882_v14  ;;  %s269_s14 = scalar_lea.vmem [#allocation8], %s1078_s9  ;;  %s620_s25 = sshll.u32 %s932_s19, 8 }
  0x6c   : > { %632 = vmatpush3.msra.mxu0 %v275_v0  ;;  %639 = vmatprep.mubr.msk.f32.mxu0 %vm276_vm0, %v270_v2  ;;  %v272_v4 = vld [vmem:[#allocation7] sm:$0xff]  ;;  %v361_v8 = vand.u32 127, %v360_v7  ;;  %v359_v13 = vld [vmem:[%s236_s2 + $0x8] sm:$0xff]  ;;  %s488_s20 = sshll.u32 %s269_s14, 4  ;;  %s1112_s29 = scalar_lea.hbm %s1158_s4, %s620_s25  ;;  %s1107_s20 = int_to_ptr.vmem [resolvable:$true] %s488_s20 }
  0x6d   : > { %633 = vmatprep.subr.mxu0 %v274_v1  ;;  %v358_v6 = vld [vmem:[%s236_s2] sm:$0xff]  ;;  %s475_s30 = scalar_lea.sflag [#allocation4], %s1075_s0  ;;  %s803_s13 = scalar_lea.vmem %s1107_s20, 256 }
  0x6e   : > { %634 = vmatpush3.msra.mxu0 %v274_v1  ;;  %646 = vmatprep.mubr.msk.f32.mxu1 %vm365_vm1, %v358_v6  ;;  %vm362_vm2 = vcmp.eq.s32.totalorder %v361_v8, 64  ;;  %v612_v21 = vld [vmem:[%s1157_s3] ss:$0 sm:$0xff]  ;;  %p804_p6 = scmp.ne.s32.totalorder %s1107_s20, %s803_s13  ;;  %p1183_p9 = scmp.ne.s32.totalorder %s1175_s10, 0 }
  0x6f   : > { %635 = vmatprep.subr.mxu0 %v273_v3  ;;  %s883_s19 = smov [#allocation8]  }
  0x70   : > { %636 = vmatpush3.msra.mxu0 %v273_v3  ;;  %p805_p12 = pnand %p804_p6, %p1183_p9  ;;  %s807_s24 = sshll.u32 %s883_s19, 4  ;;  %s808_s24 = int_to_ptr.vmem [resolvable:$false] %s807_s24 }
  0x71   : > { %637 = vmatprep.subr.mxu0 %v272_v4  ;;  %s809_s26 = scalar_lea.vmem %s808_s24, 512  ;;  %p810_p0 = scmp.lt.s32.totalorder %s1107_s20, %s808_s24 }
  0x72   : > { %638 = vmatpush3.msra.mxu0 %v272_v4  ;;  %p806_p13 = pneg %p805_p12  ;;  %p811_p5 = scmp.lt.s32.totalorder %s809_s26, %s803_s13 }
  0x73   : > { %640 = vmatmul.mubr.msk.f32.vlgmr.msra.gmra.mxu0 %vm276_vm0, %v271_v5 }
  0x74   : > { %p812_p2 = por %p811_p5, %p810_p0 }
  0x76   : > { %p813_p11 = pnand %p812_p2, %p806_p13 }
 0x133   : > { %v641_v9 = vpop.f32.mrf.mxu0 }
 0x134   : > { %v364_v10 = vsel %vm362_vm2, 1.0, %v641_v9 }
 0x135   : > { %v349_v11 = vpop.f32.mrf.mxu0  ;;  %642 = vmatprep.subr.mxu1 %v364_v10 }
 0x136   : > { %v363_v12 = vsel %vm362_vm2, 1.0, %v349_v11  ;;  %643 = vmatpush3.msra.mxu1 %v364_v10 }
 0x137   : > { %644 = vmatprep.subr.mxu1 %v363_v12 }
 0x138   : > { %645 = vmatpush3.msra.mxu1 %v363_v12 }
 0x139   : > { %647 = vmatmul.mubr.msk.f32.vlgmr.msra.gmra.mxu1 %vm365_vm1, %v359_v13 }
 0x1f9   : > { %v648_v15 = vpop.f32.mrf.mxu1 }
 0x1fa   : > { %v448_v18 = vadd.f32 1.0, %v648_v15 }
 0x1fb   : > { %v438_v16 = vpop.f32.mrf.mxu1 }
 0x1fc   : > { %v447_v17 = vadd.f32 1.0, %v438_v16 }
 0x1fe   : > { %717 = vrcp.f32 %v447_v17 }
 0x1ff   : > { %719 = vrcp.f32 %v448_v18 }
 0x20b   : > { %v718_v19 = vpop.eup %717 }
 0x20c   : > { %453 = vperm.xlu0 %716, %v718_v19   ;;  %v720_v20 = vpop.eup %719 }
 0x210   : > { %458 = vperm.xlu0 %716, %v720_v20  }
 0x287   : > { %v454_v22 = vpop.permute.xlu0 %453 }
 0x288   : > { %v461_v23 = vmul.f32 %v454_v22, %v438_v16 }
 0x28a   : > { %v470_v24 = vadd.f32 %v612_v21, %v461_v23 }
 0x28b   : > { %v459_v25 = vpop.permute.xlu0 %458 }
 0x28c   : > { %472 = vst [vmem:[%s269_s14] sm:$0xff] %v470_v24  ;;  %v462_v26 = vmul.f32 %v648_v15, %v459_v25 }
 0x28e   : > { %v471_v27 = vadd.f32 %v612_v21, %v462_v26 }
 0x290   : > { %473 = vst [vmem:[%s269_s14 + $0x8] sm:$0xff] %v471_v27 }
 0x291   : > { %816 = shalt.err (!%p813_p11)
}
 0x292   : > { %s817_s8 = scalar_lea.hbm %s1112_s29, 256  ;;  %s821_s28 = scalar_lea.hbm %s1158_s4, 1024 }
 0x293   : > { %p818_p1 = scmp.ne.s32.totalorder %s1112_s29, %s817_s8  ;;  %p822_p7 = scmp.lt.s32.totalorder %s1112_s29, %s1158_s4 }
 0x294   : > { %p823_p8 = scmp.lt.s32.totalorder %s821_s28, %s817_s8 }
 0x295   : > { %p819_p4 = pnand %p818_p1, %p1183_p9 }
 0x296   : > { %p824_p10 = por %p823_p8, %p822_p7 }
 0x297   : > { %p820_p3 = pneg %p819_p4 }
 0x299   : > { %p825_p6 = pnand %p824_p10, %p820_p3 }
 0x29b   : > { %828 = shalt.err (!%p825_p6)
}
 0x29c   : > { %s884_s2 = smov 128   ;;  %s885_s21 = smov 8  }
 0x29d   : > { %657 = dma.vmem_to_hbm [thread:$0]  (%p1183_p9), %s1107_s20, 256, %s1112_s29, %s475_s30, %s884_s2, %s884_s2, %s885_s21  }
 0x29e PF: > { %p677_p12 = scmp.ge.s32.totalorder %s875_s18, 2  ;;  %s503_s5 = sand.u32 1, %s863_s15  }
 0x29f   : > { %p1184_p13 = scmp.ne.s32.totalorder %s1169_s22, 0  ;;  %s504_s14 = scalar_lea.sflag [#allocation4], %s503_s5 }
 0x2a1   : > { %p671_p0 = pnand %p677_p12, %p1184_p13 }
 0x2a3   : > { %p672_p5 = pneg %p671_p0 }
 0x2a5   : > { %858 = dma.done.wait (%p672_p5), %s504_s14, 256  }
 0x2a6   : > { %860 = vsyncadd (%p672_p5), %s504_s14, 4294967040  ;;  %s1185_s25 = sld [smem:[#allocation13_spill]]  ;;  %p20_p2 = scmp.ge.s32.totalorder %s964_s27, 6  }
 0x2a7   : > { %s1186_s15 = smov %s867_s16  ;;  %s1187_s16 = smov %s871_s17 }
 0x2a8   : > { %s1189_s18 = smov %s964_s27  ;;  %22 = sbr.rel (!%p20_p2) target bundleno = 10 (0xa), region = 98 }
 0x2ac   : > { %s1188_s17 = smov %s1185_s25 }
 0x2ad   :  { %509 = vsyncpa [#allocation3], 1 }
 0x2ae   :  { %511 = vsyncpa [#allocation3 + $0x1], 1 }
 0x2af   :  { %512 = vsyncpa [#allocation6], 1 }
 0x2b0   :  { %514 = vsyncpa [#allocation6 + $0x1], 1 }
 0x2b1   :  { %515 = vsyncpa [#allocation4], 1 }
 0x2b2   :  { %517 = vsyncpa [#allocation4 + $0x1], 1 }

</bundles_post_ra>
